<compile_context>
chip_gen: v6e
topology: v6e:2x2x1
jax: 0.10.0
libtpu: 0.0.40
codegen_flags: <defaults>
</compile_context>

<pallas_src>
import functools

import jax
import jax.numpy as jnp
from jax import lax
from jax.experimental import pallas as pl
from jax.experimental.pallas import tpu as pltpu


def _round_up(a, b):
    return (a + b - 1) // b * b


def _vmem_capacity_bytes():
    """Per-core VMEM capacity; conservative (v7x-sized) fallback if the query fails."""
    try:
        cap = getattr(pltpu.get_tpu_info(), "vmem_capacity_bytes", None)
        if cap:
            return int(cap)
    except Exception:
        pass
    return 64 * 1024 * 1024


def _conv_taps_kernel(x_ref, w_ref, b_ref, o_ref, *, tap_offsets, mt, w_extra):
    """One (image, column-tile) step of the direct convolution.

    x_ref: (1, Cin, Lpad)      bf16  flattened zero-padded image (resident across column tiles)
    w_ref: (KH*KW, Cout, Cin)  bf16  per-tap weight matrices (resident for whole grid)
    b_ref: (Cout, 1)           f32   bias
    o_ref: (1, Cout, MT)             lane-dense tile of the padded output plane
    """
    j = pl.program_id(1)
    col0 = pl.multiple_of(j * mt, 128)
    # One lane-aligned window covering every shifted tap slice of this column tile.
    window = x_ref[0, :, pl.ds(col0, mt + w_extra)]            # (Cin, MT + w_extra) bf16

    cout = o_ref.shape[1]
    acc = jnp.zeros((cout, mt), jnp.float32)
    for t, off in enumerate(tap_offsets):                      # static, fully unrolled (KH*KW taps)
        xs = lax.slice_in_dim(window, off, off + mt, axis=1)   # (Cin, MT), static lane shift
        acc = acc + jnp.dot(w_ref[t], xs, preferred_element_type=jnp.float32)

    acc = acc + b_ref[...]                                     # (Cout, 1) broadcast over lanes
    o_ref[0] = jnp.maximum(acc, 0.0).astype(o_ref.dtype)


def conv_relu_pallas(x_nchw, w_oihw, bias, *, stride=1, padding=0, dilation=1,
                     col_tile=None, out_dtype=None):
    """PyTorch-layout Conv2d(stride, padding, dilation, bias=True) + ReLU."""
    N, Cin, H, W = x_nchw.shape
    Cout, Cin_w, KH, KW = w_oihw.shape
    assert Cin == Cin_w
    # Review: emit bf16 here (pass out_dtype=jnp.bfloat16) if the consumer accepts
    # it — halves output writeback for this HBM-bound layer.
    out_dtype = x_nchw.dtype if out_dtype is None else jnp.dtype(out_dtype)

    Hp, Wp = H + 2 * padding, W + 2 * padding
    Ho = (Hp - dilation * (KH - 1) - 1) // stride + 1
    Wo = (Wp - dilation * (KW - 1) - 1) // stride + 1
    assert Ho > 0 and Wo > 0

    # ---- layout plumbing, all in bf16 (cast BEFORE pad/reshape, per review) ----
    x = x_nchw.astype(jnp.bfloat16)
    x = jnp.pad(x, ((0, 0), (0, 0), (padding, padding), (padding, padding)))
    Mo = Hp * Wp                                          # flattened padded plane (stride-1 output)
    max_off = dilation * (KH - 1) * Wp + dilation * (KW - 1)
    w_extra = _round_up(max_off, 128)                     # lane-aligned halo past each column tile

    # Column-tile size: multiple of 128, big enough to amortize per-step overhead,
    # small enough to leave several pipelined steps per image; shrunk if the VMEM
    # estimate would exceed ~half of this generation's capacity.
    vmem_cap = _vmem_capacity_bytes()
    mt = col_tile if col_tile is not None else (512 if Mo >= 2048 else 128)
    mt = max(128, _round_up(int(mt), 128))

    def est_bytes(mt_):
        mo_pad_ = _round_up(Mo, mt_)
        lpad_ = mo_pad_ + w_extra
        in_t = _round_up(Cin, 8) * lpad_ * 2                          # bf16 image window
        w_t = KH * KW * _round_up(Cout, 8) * _round_up(Cin, 128) * 2  # layout-padded weights
        b_t = _round_up(Cout, 8) * 128 * 4
        out_t = _round_up(Cout, 8) * mt_ * out_dtype.itemsize
        return 2 * (in_t + out_t) + 2 * (w_t + b_t) + 256 * 1024      # x2 = double buffering

    while est_bytes(mt) > vmem_cap // 2 and mt > 128:
        mt //= 2
    # TODO(synk): when a whole padded image plane no longer fits VMEM (very large
    # H*W), switch to halo'd row tiles instead of shrinking the column tile.

    Mo_pad = _round_up(Mo, mt)
    Lpad = Mo_pad + w_extra
    n_col = Mo_pad // mt

    xf = jnp.pad(x.reshape(N, Cin, Mo), ((0, 0), (0, 0), (0, Lpad - Mo)))

    # OIHW -> (KH*KW, Cout, Cin): per-tap weight matrices, tap index kh-major.
    w_taps = jnp.transpose(w_oihw, (2, 3, 0, 1)).reshape(KH * KW, Cout, Cin)
    w_taps = w_taps.astype(jnp.bfloat16)
    b2 = bias.astype(jnp.float32).reshape(Cout, 1)

    # Flattened-plane offset of each tap (stride-1 dense compute; subsampled below).
    tap_offsets = tuple(kh * dilation * Wp + kw * dilation
                        for kh in range(KH) for kw in range(KW))

    kernel = functools.partial(_conv_taps_kernel, tap_offsets=tap_offsets,
                               mt=mt, w_extra=w_extra)

    vmem_limit = int(min(48 * 1024 * 1024, max(16 * 1024 * 1024, 4 * est_bytes(mt))))

    out_flat = pl.pallas_call(
        kernel,
        out_shape=jax.ShapeDtypeStruct((N, Cout, Mo_pad), out_dtype),
        grid=(N, n_col),
        in_specs=[
            # Whole flattened image: block index is constant along the column axis,
            # so it is DMA'd once per image and stays resident for all its tiles.
            pl.BlockSpec((1, Cin, Lpad), lambda n, j: (n, 0, 0)),
            # Weights / bias never change: single DMA, resident for the whole grid.
            # TODO(synk): set pipeline_mode=pl.Buffered(1) on these for multi-MB
            # production weights to halve their VMEM footprint (matters on v7x).
            pl.BlockSpec((KH * KW, Cout, Cin), lambda n, j: (0, 0, 0)),
            pl.BlockSpec((Cout, 1), lambda n, j: (0, 0)),
        ],
        out_specs=pl.BlockSpec((1, Cout, mt), lambda n, j: (n, 0, j)),
        compiler_params=pltpu.CompilerParams(
            dimension_semantics=("parallel", "parallel"),
            vmem_limit_bytes=vmem_limit,
        ),
    )(xf, w_taps, b2)
    # TODO(synk): for production layers with large Cout/Cin, additionally tile Cout
    # (and K=Cin via a reduction grid axis + f32 VMEM accumulator) so each matmul
    # fills >=128 (v5e) / >=256 (v6e, v7x) of both MXU dimensions.

    # Padded stride-1 plane -> valid, strided NCHW output (pure XLA slicing).
    out = out_flat[:, :, :Mo].reshape(N, Cout, Hp, Wp)
    out = out[:, :, : (Ho - 1) * stride + 1 : stride, : (Wo - 1) * stride + 1 : stride]
    # TODO(synk): stride > 1 computes the dense plane and subsamples (stride^2
    # overcompute); ESDNet's conv_relu uses stride=1 so this path is exact-cost.
    return out


def _reference(x_nchw, w_oihw, bias, *, stride, padding, dilation):
    out = lax.conv_general_dilated(
        x_nchw, w_oihw,
        window_strides=(stride, stride),
        padding=[(padding, padding), (padding, padding)],
        rhs_dilation=(dilation, dilation),
        dimension_numbers=("NCHW", "OIHW", "NCHW"))
    return jnp.maximum(out + bias.reshape(1, -1, 1, 1), 0.0)


if __name__ == "__main__":
    # conv_relu(in_channel=4, out_channel=8, kernel_size=3, padding=1)
    N, Cin, H, W = 2, 4, 16, 16
    Cout, K = 8, 3
    stride, padding, dilation = 1, 1, 1

    key = jax.random.PRNGKey(0)
    kx, kw, kb = jax.random.split(key, 3)
    x = jax.random.normal(kx, (N, Cin, H, W), dtype=jnp.float32)
    w = jax.random.normal(kw, (Cout, Cin, K, K), dtype=jnp.float32) * 0.1
    b = jax.random.normal(kb, (Cout,), dtype=jnp.float32) * 0.1

    fn = jax.jit(functools.partial(conv_relu_pallas, stride=stride,
                                   padding=padding, dilation=dilation))
    out = jax.block_until_ready(fn(x, w, b))

    ref = _reference(x, w, b, stride=stride, padding=padding, dilation=dilation)
    assert out.shape == ref.shape == (N, Cout, H, W), (out.shape, ref.shape)
    # bf16 MXU operands with f32 accumulation -> ~1e-2-level deviation vs the f32 ref.
    err = float(jnp.max(jnp.abs(out - ref)))
    assert jnp.allclose(out, ref, atol=5e-2, rtol=5e-2), err

    print("KERNEL_OK")
</pallas_src>

<mosaic_0001>
module attributes {stable_mosaic.version = 11 : i64} {
  func.func @_conv_taps_kernel(%arg0: i32, %arg1: i32, %arg2: memref<1x4x512xbf16, #tpu.memory_space<vmem>>, %arg3: memref<9x8x4xbf16, #tpu.memory_space<vmem>>, %arg4: memref<8x1xf32, #tpu.memory_space<vmem>>, %arg5: memref<1x8x128xf32, #tpu.memory_space<vmem>>) attributes {dimension_semantics = [#tpu.dimension_semantics<parallel>, #tpu.dimension_semantics<parallel>], iteration_bounds = array<i64: 2, 3>, scalar_prefetch = 0 : i64, scratch_operands = 0 : i64, tpu.core_type = #tpu.core_type<tc>, window_params = [{transform_indices = @transform_0, window_bounds = array<i64: 1, 4, 512>}, {pipeline_mode = #tpu.pipeline_mode<synchronous>, transform_indices = @transform_1, window_bounds = array<i64: 9, 8, 4>}, {pipeline_mode = #tpu.pipeline_mode<synchronous>, transform_indices = @transform_2, window_bounds = array<i64: 8, 1>}, {transform_indices = @transform_3, window_bounds = array<i64: 1, 8, 128>}]} {
    %c128_i32 = arith.constant 128 : i32
    %0 = arith.muli %arg1, %c128_i32 : i32
    %1 = tpu.assume_multiple %0, 128 : i32
    %c0 = arith.constant 0 : index
    %c0_0 = arith.constant 0 : index
    %2 = arith.index_cast %1 : i32 to index
    %3 = vector.load %arg2[%c0, %c0_0, %2] : memref<1x4x512xbf16, #tpu.memory_space<vmem>>, vector<1x4x256xbf16>
    %4 = vector.shape_cast %3 : vector<1x4x256xbf16> to vector<4x256xbf16>
    %cst = arith.constant 0.000000e+00 : f32
    %5 = vector.broadcast %cst : f32 to vector<8x128xf32>
    %6 = vector.extract_strided_slice %4 {offsets = [0, 0], sizes = [4, 128], strides = [1, 1]} : vector<4x256xbf16> to vector<4x128xbf16>
    %c0_1 = arith.constant 0 : index
    %c0_2 = arith.constant 0 : index
    %c0_3 = arith.constant 0 : index
    %7 = vector.load %arg3[%c0_1, %c0_2, %c0_3] : memref<9x8x4xbf16, #tpu.memory_space<vmem>>, vector<1x8x4xbf16>
    %8 = vector.shape_cast %7 : vector<1x8x4xbf16> to vector<8x4xbf16>
    %cst_4 = arith.constant dense<0.000000e+00> : vector<8x128xf32>
    %9 = tpu.matmul %8, %6, %cst_4 {dimension_numbers = #tpu.dot_dimension_numbers<[1], [0], [0], [1], [0, 0, 1, 1], [], []>} : vector<8x4xbf16>, vector<4x128xbf16>, vector<8x128xf32> -> vector<8x128xf32>
    %10 = arith.addf %5, %9 : vector<8x128xf32>
    %11 = vector.extract_strided_slice %4 {offsets = [0, 1], sizes = [4, 128], strides = [1, 1]} : vector<4x256xbf16> to vector<4x128xbf16>
    %c1 = arith.constant 1 : index
    %c0_5 = arith.constant 0 : index
    %c0_6 = arith.constant 0 : index
    %12 = vector.load %arg3[%c1, %c0_5, %c0_6] : memref<9x8x4xbf16, #tpu.memory_space<vmem>>, vector<1x8x4xbf16>
    %13 = vector.shape_cast %12 : vector<1x8x4xbf16> to vector<8x4xbf16>
    %cst_7 = arith.constant dense<0.000000e+00> : vector<8x128xf32>
    %14 = tpu.matmul %13, %11, %cst_7 {dimension_numbers = #tpu.dot_dimension_numbers<[1], [0], [0], [1], [0, 0, 1, 1], [], []>} : vector<8x4xbf16>, vector<4x128xbf16>, vector<8x128xf32> -> vector<8x128xf32>
    %15 = arith.addf %10, %14 : vector<8x128xf32>
    %16 = vector.extract_strided_slice %4 {offsets = [0, 2], sizes = [4, 128], strides = [1, 1]} : vector<4x256xbf16> to vector<4x128xbf16>
    %c2 = arith.constant 2 : index
    %c0_8 = arith.constant 0 : index
    %c0_9 = arith.constant 0 : index
    %17 = vector.load %arg3[%c2, %c0_8, %c0_9] : memref<9x8x4xbf16, #tpu.memory_space<vmem>>, vector<1x8x4xbf16>
    %18 = vector.shape_cast %17 : vector<1x8x4xbf16> to vector<8x4xbf16>
    %cst_10 = arith.constant dense<0.000000e+00> : vector<8x128xf32>
    %19 = tpu.matmul %18, %16, %cst_10 {dimension_numbers = #tpu.dot_dimension_numbers<[1], [0], [0], [1], [0, 0, 1, 1], [], []>} : vector<8x4xbf16>, vector<4x128xbf16>, vector<8x128xf32> -> vector<8x128xf32>
    %20 = arith.addf %15, %19 : vector<8x128xf32>
    %21 = vector.extract_strided_slice %4 {offsets = [0, 18], sizes = [4, 128], strides = [1, 1]} : vector<4x256xbf16> to vector<4x128xbf16>
    %c3 = arith.constant 3 : index
    %c0_11 = arith.constant 0 : index
    %c0_12 = arith.constant 0 : index
    %22 = vector.load %arg3[%c3, %c0_11, %c0_12] : memref<9x8x4xbf16, #tpu.memory_space<vmem>>, vector<1x8x4xbf16>
    %23 = vector.shape_cast %22 : vector<1x8x4xbf16> to vector<8x4xbf16>
    %cst_13 = arith.constant dense<0.000000e+00> : vector<8x128xf32>
    %24 = tpu.matmul %23, %21, %cst_13 {dimension_numbers = #tpu.dot_dimension_numbers<[1], [0], [0], [1], [0, 0, 1, 1], [], []>} : vector<8x4xbf16>, vector<4x128xbf16>, vector<8x128xf32> -> vector<8x128xf32>
    %25 = arith.addf %20, %24 : vector<8x128xf32>
    %26 = vector.extract_strided_slice %4 {offsets = [0, 19], sizes = [4, 128], strides = [1, 1]} : vector<4x256xbf16> to vector<4x128xbf16>
    %c4 = arith.constant 4 : index
    %c0_14 = arith.constant 0 : index
    %c0_15 = arith.constant 0 : index
    %27 = vector.load %arg3[%c4, %c0_14, %c0_15] : memref<9x8x4xbf16, #tpu.memory_space<vmem>>, vector<1x8x4xbf16>
    %28 = vector.shape_cast %27 : vector<1x8x4xbf16> to vector<8x4xbf16>
    %cst_16 = arith.constant dense<0.000000e+00> : vector<8x128xf32>
    %29 = tpu.matmul %28, %26, %cst_16 {dimension_numbers = #tpu.dot_dimension_numbers<[1], [0], [0], [1], [0, 0, 1, 1], [], []>} : vector<8x4xbf16>, vector<4x128xbf16>, vector<8x128xf32> -> vector<8x128xf32>
    %30 = arith.addf %25, %29 : vector<8x128xf32>
    %31 = vector.extract_strided_slice %4 {offsets = [0, 20], sizes = [4, 128], strides = [1, 1]} : vector<4x256xbf16> to vector<4x128xbf16>
    %c5 = arith.constant 5 : index
    %c0_17 = arith.constant 0 : index
    %c0_18 = arith.constant 0 : index
    %32 = vector.load %arg3[%c5, %c0_17, %c0_18] : memref<9x8x4xbf16, #tpu.memory_space<vmem>>, vector<1x8x4xbf16>
    %33 = vector.shape_cast %32 : vector<1x8x4xbf16> to vector<8x4xbf16>
    %cst_19 = arith.constant dense<0.000000e+00> : vector<8x128xf32>
    %34 = tpu.matmul %33, %31, %cst_19 {dimension_numbers = #tpu.dot_dimension_numbers<[1], [0], [0], [1], [0, 0, 1, 1], [], []>} : vector<8x4xbf16>, vector<4x128xbf16>, vector<8x128xf32> -> vector<8x128xf32>
    %35 = arith.addf %30, %34 : vector<8x128xf32>
    %36 = vector.extract_strided_slice %4 {offsets = [0, 36], sizes = [4, 128], strides = [1, 1]} : vector<4x256xbf16> to vector<4x128xbf16>
    %c6 = arith.constant 6 : index
    %c0_20 = arith.constant 0 : index
    %c0_21 = arith.constant 0 : index
    %37 = vector.load %arg3[%c6, %c0_20, %c0_21] : memref<9x8x4xbf16, #tpu.memory_space<vmem>>, vector<1x8x4xbf16>
    %38 = vector.shape_cast %37 : vector<1x8x4xbf16> to vector<8x4xbf16>
    %cst_22 = arith.constant dense<0.000000e+00> : vector<8x128xf32>
    %39 = tpu.matmul %38, %36, %cst_22 {dimension_numbers = #tpu.dot_dimension_numbers<[1], [0], [0], [1], [0, 0, 1, 1], [], []>} : vector<8x4xbf16>, vector<4x128xbf16>, vector<8x128xf32> -> vector<8x128xf32>
    %40 = arith.addf %35, %39 : vector<8x128xf32>
    %41 = vector.extract_strided_slice %4 {offsets = [0, 37], sizes = [4, 128], strides = [1, 1]} : vector<4x256xbf16> to vector<4x128xbf16>
    %c7 = arith.constant 7 : index
    %c0_23 = arith.constant 0 : index
    %c0_24 = arith.constant 0 : index
    %42 = vector.load %arg3[%c7, %c0_23, %c0_24] : memref<9x8x4xbf16, #tpu.memory_space<vmem>>, vector<1x8x4xbf16>
    %43 = vector.shape_cast %42 : vector<1x8x4xbf16> to vector<8x4xbf16>
    %cst_25 = arith.constant dense<0.000000e+00> : vector<8x128xf32>
    %44 = tpu.matmul %43, %41, %cst_25 {dimension_numbers = #tpu.dot_dimension_numbers<[1], [0], [0], [1], [0, 0, 1, 1], [], []>} : vector<8x4xbf16>, vector<4x128xbf16>, vector<8x128xf32> -> vector<8x128xf32>
    %45 = arith.addf %40, %44 : vector<8x128xf32>
    %46 = vector.extract_strided_slice %4 {offsets = [0, 38], sizes = [4, 128], strides = [1, 1]} : vector<4x256xbf16> to vector<4x128xbf16>
    %c8 = arith.constant 8 : index
    %c0_26 = arith.constant 0 : index
    %c0_27 = arith.constant 0 : index
    %47 = vector.load %arg3[%c8, %c0_26, %c0_27] : memref<9x8x4xbf16, #tpu.memory_space<vmem>>, vector<1x8x4xbf16>
    %48 = vector.shape_cast %47 : vector<1x8x4xbf16> to vector<8x4xbf16>
    %cst_28 = arith.constant dense<0.000000e+00> : vector<8x128xf32>
    %49 = tpu.matmul %48, %46, %cst_28 {dimension_numbers = #tpu.dot_dimension_numbers<[1], [0], [0], [1], [0, 0, 1, 1], [], []>} : vector<8x4xbf16>, vector<4x128xbf16>, vector<8x128xf32> -> vector<8x128xf32>
    %50 = arith.addf %45, %49 : vector<8x128xf32>
    %c0_29 = arith.constant 0 : index
    %c0_30 = arith.constant 0 : index
    %51 = vector.load %arg4[%c0_29, %c0_30] : memref<8x1xf32, #tpu.memory_space<vmem>>, vector<8x1xf32>
    %52 = vector.broadcast %51 : vector<8x1xf32> to vector<8x128xf32>
    %53 = arith.addf %50, %52 : vector<8x128xf32>
    %cst_31 = arith.constant 0.000000e+00 : f32
    %54 = vector.broadcast %cst_31 : f32 to vector<8x128xf32>
    %55 = arith.maximumf %53, %54 : vector<8x128xf32>
    %c0_32 = arith.constant 0 : index
    %c0_33 = arith.constant 0 : index
    %c0_34 = arith.constant 0 : index
    %56 = vector.load %arg5[%c0_32, %c0_33, %c0_34] : memref<1x8x128xf32, #tpu.memory_space<vmem>>, vector<1x8x128xf32>
    %57 = vector.shape_cast %56 : vector<1x8x128xf32> to vector<8x128xf32>
    %58 = vector.shape_cast %55 : vector<8x128xf32> to vector<1x8x128xf32>
    tpu.vector_store %arg5[%c0_32, %c0_33, %c0_34], %58 {strides = array<i32>} : memref<1x8x128xf32, #tpu.memory_space<vmem>>, vector<1x8x128xf32>,
    return
  }
  func.func @transform_0(%arg0: i32, %arg1: i32) -> (i32, i32, i32) {
    %c0_i32 = arith.constant 0 : i32
    %c0_i32_0 = arith.constant 0 : i32
    %c0_i32_1 = arith.constant 0 : i32
    return %arg0, %c0_i32, %c0_i32_0 : i32, i32, i32
  }
  func.func @transform_1(%arg0: i32, %arg1: i32) -> (i32, i32, i32) {
    %c0_i32 = arith.constant 0 : i32
    %c0_i32_0 = arith.constant 0 : i32
    %c0_i32_1 = arith.constant 0 : i32
    %c0_i32_2 = arith.constant 0 : i32
    return %c0_i32, %c0_i32_0, %c0_i32_1 : i32, i32, i32
  }
  func.func @transform_2(%arg0: i32, %arg1: i32) -> (i32, i32) {
    %c0_i32 = arith.constant 0 : i32
    %c0_i32_0 = arith.constant 0 : i32
    %c0_i32_1 = arith.constant 0 : i32
    return %c0_i32, %c0_i32_0 : i32, i32
  }
  func.func @transform_3(%arg0: i32, %arg1: i32) -> (i32, i32, i32) {
    %c0_i32 = arith.constant 0 : i32
    %c0_i32_0 = arith.constant 0 : i32
    return %arg0, %c0_i32, %arg1 : i32, i32, i32
  }
}

</mosaic_0001>

<bundles_post_ra>
// kernel: conv_relu_pallas.1
= control target key start
LH: loop header
LB: loop body
LE: loop exit
PB: predicated region body
PF: predicated region fallthrough
CT: control target
= control target key end

     0   :  { %s1014_s12 = smov 0   ;;  %s1016_s13 = smov 0   ;;  %s1149_s0 = inlined_call_operand.vmem [shape: bf16[2,4,512], index: 0, kind: input, shape index: {}]   ;;  %s1150_s1 = inlined_call_operand.vmem [shape: bf16[9,8,4], index: 1, kind: input, shape index: {}]   ;;  %s1151_s2 = inlined_call_operand.vmem [shape: f32[8,1], index: 2, kind: input, shape index: {}]   ;;  %s1152_s3 = inlined_call_operand.vmem [shape: f32[2,8,384], index: 3, kind: output, shape index: {}]  }
   0x1   :  { %s1018_s14 = smov 0   ;;  %s1020_s15 = smov 0  }
   0x2   :  { %s1022_s16 = smov 0  }
   0x3 LB: > { %s22_s17 = sadd.s32 1, %s972_s14  ;;  %s25_s18 = sadd.s32 1, %s976_s15  ;;  %s980_s16 = sphi %s1022_s16, %s13_s16   ;;  %s976_s15 = sphi %s1020_s15, %s1156_s15   ;;  %s972_s14 = sphi %s1018_s14, %s1155_s14   ;;  %s968_s13 = sphi %s1016_s13, %s1154_s13   ;;  %s964_s12 = sphi %s1014_s12, %s1153_s12  }
   0x4   : > { %p23_p0 = scmp.ge.s32.totalorder %s22_s17, 3  ;;  %p790_p1 = scmp.ge.s32.totalorder %s980_s16, 1 }
   0x5   : > { %p151_p2 = scmp.lt.s32.totalorder %s980_s16, 7 }
   0x6   : > { %s1158_s17 = smov (%p23_p0, %s22_s17), 0  ;;  %s1160_s18 = smov (!%p23_p0, %s25_s18), %s976_s15 }
   0x7   : > { %p152_p3 = pnand %p790_p1, %p151_p2  ;;  %p27_p4 = scmp.ge.s32.totalorder %s1160_s18, 2 }
   0x8   : > { %p178_p5 = scmp.lt.s32.totalorder (!%p152_p3), %s968_s13, 1  ;;  %s794_s19 = sshll.u32 (!%p152_p3), %s964_s12, 7 }
   0x9   : > { %s1162_s18 = smov (%p27_p4, %s1160_s18), 0  ;;  %155 = sbr.rel (%p152_p3) target bundleno = 379 (0x17b), region = 32 }
   0xa   : > { %s193_s20 = sshra.s32 (!%p152_p3), %s794_s19, 7  ;;  %s985_s29 = smov (!%p152_p3), 126  }
   0xb   : > { %s795_s21 = sshll.u32 (!%p152_p3), %s193_s20, 1  ;;  %s986_s30 = smov (!%p152_p3), 127  }
   0xc   : > { %s987_s4 = smov (!%p152_p3), 110   ;;  %s988_s5 = smov (!%p152_p3), 109  }
   0xd   : > { %s989_s6 = smov (!%p152_p3), 108   ;;  %s990_s7 = smov (!%p152_p3), 92  }
   0xe   : > { %v205_v0 = vlaneseq  ;;  %v982_v1 = vmov 1983009808   ;;  %s1164_s13 = smov (!%p178_p5, %s968_s13), 1  ;;  %v983_v4 = vmov 0.0   ;;  %vm984_vm0 = vmmov 0   ;;  %s991_s8 = smov 91  }
   0xf   : > { %v203_v2 = vunpack.c.l.s4 %v982_v1  ;;  %834 = vmatprep.subr.bf16.mxu0 %v983_v4  ;;  %840 = vmatprep.subr.bf16.mxu1 %v983_v4  ;;  %s815_s22 = sshll.u32 %s1164_s13, 3  ;;  %vm220_vm1 = vcmask 1041408   ;;  %vm216_vm2 = vcmask 31744   ;;  %v198_v10 = vld [vmem:[%s1150_s1] sm:$0xf]  ;;  %s992_s9 = smov 90  }
  0x10   : > { %v206_v3 = vshrl.u32 %v205_v0, 7  ;;  %836 = vmatprep.mubr.msk.bf16.mxu0 %vm984_vm0, %v983_v4  ;;  %842 = vmatprep.mubr.msk.bf16.mxu1 %vm984_vm0, %v983_v4  ;;  %s182_s25 = scalar_lea.vmem %s1149_s0, %s815_s22  ;;  %v993_v12 = vmov 0   ;;  %v695_v13 = vld [vmem:[%s1151_s2] sm:$0xff]  ;;  %vm316_vm3 = vcmask 1031168   ;;  %vm214_vm4 = vcmask 1039360   ;;  %p185_p6 = scmp.lt.s32.totalorder %s964_s12, 2 }
  0x11   : > { %v204_v5 = vunpack.c.0.s8 %v203_v2  ;;  %s196_s26 = scalar_lea.vmem %s182_s25, %s795_s21  ;;  %941 = vset.pattern.permute.xlu0 %v993_v12  ;;  %vm371_vm5 = vcmask 900096   ;;  %v796_v21 = vld [vmem:[%s1150_s1 + $0x4] sm:$0xf]  ;;  %vm426_vm6 = vcmask 891904   ;;  %v801_v27 = vld [vmem:[%s1150_s1 + $0xc] sm:$0xf] }
  0x12   : > { %v197_v7 = vld [vmem:[%s196_s26] sm:$0xf]  ;;  %vm481_vm7 = vcmask 883712   ;;  %v799_v31 = vld [vmem:[%s1150_s1 + $0x8] sm:$0xf]  ;;  %vm536_vm8 = vcmask 752640  }
  0x13   : > { %v207_v6 = vsub.s32 %v204_v5, %v206_v3  ;;  %v268_v9 = vsel %vm220_vm1, %v197_v7, 0  ;;  %v805_v37 = vld [vmem:[%s1150_s1 + $0x14] sm:$0xf]  ;;  %vm591_vm9 = vcmask 744448   ;;  %v803_v41 = vld [vmem:[%s1150_s1 + $0x10] sm:$0xf] }
  0x14   : > { %841 = vmatpush3.bf16.msra.mxu1 %v268_v9  ;;  %vm646_vm10 = vcmask 736256   ;;  %v809_v47 = vld [vmem:[%s1150_s1 + $0x1c] sm:$0xf]  ;;  %v807_v51 = vld [vmem:[%s1150_s1 + $0x18] sm:$0xf]  ;;  %s1166_s12 = smov (!%p185_p6, %s964_s12), 2 }
  0x15   : > { %v208_v8 = vrot.slane %v197_v7, %v207_v6  ;;  %852 = vmatprep.subr.bf16.mxu1 %v983_v4  ;;  %v811_v53 = vld [vmem:[%s1150_s1 + $0x20] sm:$0xf] }
  0x17   : > { %312 = vrot.lane.b32.xlu1 %v208_v8, %s985_s29  ;;  %210 = vrot.lane.b32.xlu0 %v208_v8, %s986_s30  ;;  %v209_v11 = vcombine.high %v208_v8, %v208_v8 }
  0x18   : > { %843 = vmatmul.mubr.msk.bf16.vlgmr.msra.gmra.mxu1 %vm216_vm2, %v198_v10 }
  0x19   : > { %854 = vmatprep.mubr.msk.bf16.mxu1 %vm984_vm0, %v983_v4 }
  0x1b   : > { %314 = vrot.lane.b32.xlu1 %v209_v11, %s985_s29  ;;  %212 = vrot.lane.b32.xlu0 %v209_v11, %s986_s30 }
  0x1f   : > { %369 = vrot.lane.b32.xlu1 %v209_v11, %s987_s4  ;;  %367 = vrot.lane.b32.xlu0 %v208_v8, %s987_s4 }
  0x23   : > { %424 = vrot.lane.b32.xlu1 %v209_v11, %s988_s5  ;;  %422 = vrot.lane.b32.xlu0 %v208_v8, %s988_s5 }
  0x27   : > { %479 = vrot.lane.b32.xlu1 %v209_v11, %s989_s6  ;;  %477 = vrot.lane.b32.xlu0 %v208_v8, %s989_s6 }
  0x2b   : > { %534 = vrot.lane.b32.xlu1 %v209_v11, %s990_s7  ;;  %532 = vrot.lane.b32.xlu0 %v208_v8, %s990_s7 }
  0x2f   : > { %589 = vrot.lane.b32.xlu1 %v209_v11, %s991_s8  ;;  %587 = vrot.lane.b32.xlu0 %v208_v8, %s991_s8  ;;  %s888_s8 = smul.u32 3, %s1164_s13 }
  0x33   : > { %644 = vrot.lane.b32.xlu1 %v209_v11, %s992_s9  ;;  %642 = vrot.lane.b32.xlu0 %v208_v8, %s992_s9  ;;  %s188_s9 = sadd.s32 %s888_s8, %s1166_s12 }
  0x34   : > { %s793_s10 = sshll.u32 %s188_s9, 3 }
  0x35   : > { %s190_s20 = scalar_lea.vmem %s1152_s3, %s793_s10 }
  0x37   : > { %698 = vperm.xlu0 %941, %v695_v13  }
  0x89   : > { %v313_v14 = vpop.permute.xlu1 %312  ;;  %v211_v15 = vpop.permute.xlu0 %210 }
  0x8d   : > { %v315_v16 = vpop.permute.xlu1 %314  ;;  %v213_v17 = vpop.permute.xlu0 %212 }
  0x8e   : > { %v317_v18 = vsel %vm316_vm3, %v313_v14, %v315_v16  ;;  %v215_v19 = vsel %vm214_vm4, %v211_v15, %v213_v17 }
  0x8f   : > { %v222_v20 = vsel %vm220_vm1, %v215_v19, 0  ;;  %v322_v22 = vsel %vm220_vm1, %v317_v18, 0 }
  0x90   : > { %835 = vmatpush3.bf16.msra.mxu0 %v222_v20 }
  0x91   : > { %846 = vmatprep.subr.bf16.mxu0 %v983_v4  ;;  %v370_v23 = vpop.permute.xlu1 %369  ;;  %v368_v24 = vpop.permute.xlu0 %367 }
  0x92   : > { %v372_v25 = vsel %vm371_vm5, %v368_v24, %v370_v23 }
  0x93   : > { %837 = vmatmul.mubr.msk.bf16.vlgmr.msra.gmra.mxu0 %vm216_vm2, %v796_v21  ;;  %v377_v26 = vsel %vm220_vm1, %v372_v25, 0 }
  0x94   : > { %847 = vmatpush3.bf16.msra.mxu0 %v322_v22  ;;  %853 = vmatpush3.bf16.msra.mxu1 %v377_v26 }
  0x95   : > { %v425_v28 = vpop.permute.xlu1 %424  ;;  %v423_v29 = vpop.permute.xlu0 %422  ;;  %848 = vmatprep.mubr.msk.bf16.mxu0 %vm984_vm0, %v983_v4  ;;  %858 = vmatprep.subr.bf16.mxu0 %v983_v4 }
  0x96   : > { %v427_v30 = vsel %vm426_vm6, %v423_v29, %v425_v28  ;;  %864 = vmatprep.subr.bf16.mxu1 %v983_v4 }
  0x97   : > { %855 = vmatmul.mubr.msk.bf16.vlgmr.msra.gmra.mxu1 %vm216_vm2, %v801_v27  ;;  %v432_v32 = vsel %vm220_vm1, %v427_v30, 0 }
  0x98   : > { %866 = vmatprep.mubr.msk.bf16.mxu1 %vm984_vm0, %v983_v4 }
  0x99   : > { %v480_v33 = vpop.permute.xlu1 %479  ;;  %v478_v34 = vpop.permute.xlu0 %477 }
  0x9a   : > { %v482_v35 = vsel %vm481_vm7, %v478_v34, %v480_v33 }
  0x9b   : > { %849 = vmatmul.mubr.msk.bf16.vlgmr.msra.gmra.mxu0 %vm216_vm2, %v799_v31  ;;  %v487_v36 = vsel %vm220_vm1, %v482_v35, 0 }
  0x9c   : > { %859 = vmatpush3.bf16.msra.mxu0 %v432_v32  ;;  %865 = vmatpush3.bf16.msra.mxu1 %v487_v36 }
  0x9d   : > { %v535_v38 = vpop.permute.xlu1 %534  ;;  %v533_v39 = vpop.permute.xlu0 %532  ;;  %860 = vmatprep.mubr.msk.bf16.mxu0 %vm984_vm0, %v983_v4  ;;  %870 = vmatprep.subr.bf16.mxu0 %v983_v4 }
  0x9e   : > { %v537_v40 = vsel %vm536_vm8, %v533_v39, %v535_v38  ;;  %876 = vmatprep.subr.bf16.mxu1 %v983_v4 }
  0x9f   : > { %867 = vmatmul.mubr.msk.bf16.vlgmr.msra.gmra.mxu1 %vm216_vm2, %v805_v37  ;;  %v542_v42 = vsel %vm220_vm1, %v537_v40, 0 }
  0xa0   : > { %878 = vmatprep.mubr.msk.bf16.mxu1 %vm984_vm0, %v983_v4 }
  0xa1   : > { %v590_v43 = vpop.permute.xlu1 %589  ;;  %v588_v44 = vpop.permute.xlu0 %587 }
  0xa2   : > { %v592_v45 = vsel %vm591_vm9, %v588_v44, %v590_v43 }
  0xa3   : > { %861 = vmatmul.mubr.msk.bf16.vlgmr.msra.gmra.mxu0 %vm216_vm2, %v803_v41  ;;  %v597_v46 = vsel %vm220_vm1, %v592_v45, 0 }
  0xa4   : > { %871 = vmatpush3.bf16.msra.mxu0 %v542_v42  ;;  %877 = vmatpush3.bf16.msra.mxu1 %v597_v46 }
  0xa5   : > { %v645_v48 = vpop.permute.xlu1 %644  ;;  %v643_v49 = vpop.permute.xlu0 %642  ;;  %872 = vmatprep.mubr.msk.bf16.mxu0 %vm984_vm0, %v983_v4  ;;  %882 = vmatprep.subr.bf16.mxu0 %v983_v4 }
  0xa6   : > { %v647_v50 = vsel %vm646_vm10, %v643_v49, %v645_v48 }
  0xa7   : > { %879 = vmatmul.mubr.msk.bf16.vlgmr.msra.gmra.mxu1 %vm216_vm2, %v809_v47  ;;  %v652_v52 = vsel %vm220_vm1, %v647_v50, 0 }
  0xab   : > { %873 = vmatmul.mubr.msk.bf16.vlgmr.msra.gmra.mxu0 %vm216_vm2, %v807_v51 }
  0xac   : > { %883 = vmatpush3.bf16.msra.mxu0 %v652_v52  ;;  %884 = vmatprep.mubr.msk.bf16.mxu0 %vm984_vm0, %v983_v4 }
  0xb2   : > { %v699_v30 = vpop.permute.xlu0 %698 }
  0xb3   : > { %885 = vmatmul.mubr.msk.bf16.vlgmr.msra.gmra.mxu0 %vm216_vm2, %v811_v53 }
  0xd8   : > { %v304_v54 = vpop.f32.mrf.mxu1 }
  0xda   : > { %v844_v55 = vpop.f32.mrf.mxu1 }
  0xdc   : > { %v307_v56 = vpop.f32.mrf.mxu1 }
  0xde   : > { %v845_v57 = vpop.f32.mrf.mxu1 }
 0x153   : > { %v258_v58 = vpop.f32.mrf.mxu0 }
 0x154   : > { %v305_v6 = vadd.f32 %v304_v54, %v258_v58 }
 0x155   : > { %v838_v59 = vpop.f32.mrf.mxu0 }
 0x157   : > { %v261_v60 = vpop.f32.mrf.mxu0  ;;  %v413_v61 = vpop.f32.mrf.mxu1 }
 0x159   : > { %v839_v62 = vpop.f32.mrf.mxu0  ;;  %v856_v63 = vpop.f32.mrf.mxu1 }
 0x15b   : > { %v358_v0 = vpop.f32.mrf.mxu0  ;;  %v416_v1 = vpop.f32.mrf.mxu1 }
 0x15c   : > { %v364_v9 = vadd.f32 %v358_v0, %v305_v6 }
 0x15d   : > { %v850_v2 = vpop.f32.mrf.mxu0  ;;  %v857_v3 = vpop.f32.mrf.mxu1 }
 0x15e   : > { %v419_v14 = vadd.f32 %v413_v61, %v364_v9 }
 0x15f   : > { %v361_v4 = vpop.f32.mrf.mxu0  ;;  %v523_v5 = vpop.f32.mrf.mxu1 }
 0x161   : > { %v851_v7 = vpop.f32.mrf.mxu0  ;;  %v868_v8 = vpop.f32.mrf.mxu1 }
 0x163   : > { %v468_v10 = vpop.f32.mrf.mxu0  ;;  %v526_v11 = vpop.f32.mrf.mxu1 }
 0x164   : > { %v474_v17 = vadd.f32 %v468_v10, %v419_v14 }
 0x165   : > { %v862_v12 = vpop.f32.mrf.mxu0  ;;  %v869_v13 = vpop.f32.mrf.mxu1 }
 0x166   : > { %v529_v22 = vadd.f32 %v523_v5, %v474_v17 }
 0x167   : > { %v471_v15 = vpop.f32.mrf.mxu0  ;;  %v633_v16 = vpop.f32.mrf.mxu1 }
 0x169   : > { %v863_v18 = vpop.f32.mrf.mxu0  ;;  %v880_v19 = vpop.f32.mrf.mxu1 }
 0x16b   : > { %v578_v20 = vpop.f32.mrf.mxu0  ;;  %v636_v21 = vpop.f32.mrf.mxu1 }
 0x16c   : > { %v584_v25 = vadd.f32 %v578_v20, %v529_v22 }
 0x16d   : > { %v874_v23 = vpop.f32.mrf.mxu0  ;;  %v881_v24 = vpop.f32.mrf.mxu1 }
 0x16e   : > { %v639_v28 = vadd.f32 %v633_v16, %v584_v25 }
 0x16f   : > { %v581_v26 = vpop.f32.mrf.mxu0 }
 0x171   : > { %v875_v27 = vpop.f32.mrf.mxu0 }
 0x173   : > { %v688_v29 = vpop.f32.mrf.mxu0 }
 0x174   : > { %v694_v31 = vadd.f32 %v688_v29, %v639_v28 }
 0x175   : > { %v886_v32 = vpop.f32.mrf.mxu0 }
 0x176   : > { %v701_v33 = vadd.f32 %v699_v30, %v694_v31 }
 0x177   : > { %v691_v34 = vpop.f32.mrf.mxu0 }
 0x178   : > { %v702_v35 = vmax.f32 %v701_v33, 0.0 }
 0x179   : > { %v887_v36 = vpop.f32.mrf.mxu0 }
 0x17a   : > { %703 = vst [vmem:[%s190_s20] sm:$0xff] %v702_v35 }
 0x17b PF: > { %s13_s16 = sadd.s32 1, %s980_s16   ;;  %s1153_s12 = smov %s972_s14 }
 0x17c   : > { %p10_p7 = scmp.ge.s32.totalorder %s13_s16, 8   ;;  %s1154_s13 = smov %s976_s15 }
 0x17d   : > { %s1155_s14 = smov %s1158_s17  ;;  %s1156_s15 = smov %s1162_s18 }
 0x17e   :  { %12 = sbr.rel (!%p10_p7) target bundleno = 3 (0x3), region = 71 }

</bundles_post_ra>
